<compile_context>
chip_gen: v7x
topology: tpu7x:2x2x1
jax: 0.10.0
libtpu: 0.0.40
codegen_flags: <defaults>
</compile_context>

<pallas_src>
import functools

import jax
import jax.numpy as jnp
import numpy as np
from jax.experimental import pallas as pl
from jax.experimental.pallas import tpu as pltpu
from jax.scipy.special import gammaln


# ---------------------------------------------------------------------------
# Lanczos lgamma (g = 7, 9 coefficients) in rational form:
#   A_g(z) = c0 + sum_i c_i/(z+i)  ==  NUM(z) / DEN(z)
# NUM/DEN are degree-8 polynomials precomputed in float64 at import time and
# evaluated by Horner inside the kernel -> 1 divide + 2 logs per lgamma call
# (EUP), with the mul/adds landing on VALU slots which have slack.
# Valid for x > ~0.5 (all arguments here are >= min(alpha, beta, 1)).
# ---------------------------------------------------------------------------
_LANCZOS_G = 7.0
_LANCZOS_COEF = (
    0.99999999999980993,
    676.5203681218851,
    -1259.1392167224028,
    771.32342877765313,
    -176.61502916214059,
    12.507343278686905,
    -0.13857109526572012,
    9.9843695780195716e-6,
    1.5056327351493116e-7,
)
_HALF_LOG_2PI = 0.5 * float(np.log(2.0 * np.pi))


def _build_rational_lanczos():
    den = np.poly1d([1.0])
    for i in range(1, 9):
        den = den * np.poly1d([1.0, float(i)])            # prod (z + i)
    num = _LANCZOS_COEF[0] * den
    for i in range(1, 9):
        p = np.poly1d([1.0])
        for j in range(1, 9):
            if j != i:
                p = p * np.poly1d([1.0, float(j)])
        num = num + _LANCZOS_COEF[i] * p
    return (tuple(float(c) for c in num.coeffs),
            tuple(float(c) for c in den.coeffs))


_NUM_COEF, _DEN_COEF = _build_rational_lanczos()


def _horner(coefs, z):
    acc = jnp.full_like(z, coefs[0])
    for c in coefs[1:]:
        acc = acc * z + c
    return acc


def _lgamma(x):
    """log Gamma(x) for x > 0.5 (elementwise, f32)."""
    z = x - 1.0
    acc = _horner(_NUM_COEF, z) / _horner(_DEN_COEF, z)   # A_g(z), single divide
    t = z + (_LANCZOS_G + 0.5)
    return _HALF_LOG_2PI + (z + 0.5) * jnp.log(t) - t + jnp.log(acc)


# ---------------------------------------------------------------------------
# Pallas kernel: per-batch-element mixture log-likelihood
#   log P(a | d) = logsumexp_k [ log w_k + log P_k(a | d) ]
# with K-1 binomial components and one beta-binomial background component.
# ---------------------------------------------------------------------------
def _somatic_spectrum_kernel(logw_ref, logf_ref, log1mf_ref, ab_ref,
                             d_ref, a_ref, o_ref, *, K: int):
    d = d_ref[...]            # (R_TILE, 128) f32 depths
    a = a_ref[...]            # (R_TILE, 128) f32 alt counts
    dma = d - a

    alpha = ab_ref[0]
    beta = ab_ref[1]
    bb_scalar = ab_ref[2]     # logw[K-1] + lgamma(a+b) - lgamma(a) - lgamma(b)

    # shared combinatorial term -- factored out of the logsumexp, added once
    comb = _lgamma(d + 1.0) - _lgamma(a + 1.0) - _lgamma(dma + 1.0)

    weighted = []
    # K-1 simple binomial components (scalar log-weight folded into the chain)
    for k in range(K - 1):
        weighted.append(a * logf_ref[k] + dma * log1mf_ref[k] + logw_ref[k])

    # beta-binomial background component (exact integral), scalars pre-folded
    weighted.append(_lgamma(a + alpha) + _lgamma(dma + beta)
                    - _lgamma(d + alpha + beta) + bb_scalar)

    # logsumexp over the K components (small static unroll; VPU max/add, EUP exp)
    m = weighted[0]
    for w in weighted[1:]:
        m = jnp.maximum(m, w)
    s = jnp.exp(weighted[0] - m)
    for w in weighted[1:]:
        s = s + jnp.exp(w - m)
    o_ref[...] = comb + m + jnp.log(s)


# ---------------------------------------------------------------------------
# Wrapper (parameter transforms + lane-dense reshaping are plain-JAX glue)
# ---------------------------------------------------------------------------
def _round_up(x, m):
    return ((x + m - 1) // m) * m


def _pick_tiling(batch_size):
    rows = (batch_size + 127) // 128            # lane-dense rows of 128
    rows8 = max(8, _round_up(rows, 8))          # full-vreg sublane multiple
    if rows8 <= 8:
        r_tile = 8                              # tiny batch: one (8,128) block
    else:
        # >= 2 grid steps so both v7x TensorCores get work; cap block at 512 rows
        r_tile = min(512, _round_up((rows8 + 1) // 2, 8))
    rows_pad = _round_up(rows8, r_tile)
    return rows_pad, r_tile


def somatic_spectrum_forward(weights_pre_softmax_k, f_pre_sigmoid_k,
                             alpha_pre_exp, beta_pre_exp,
                             depths_b, alt_counts_b):
    K = int(weights_pre_softmax_k.shape[0])
    B = int(depths_b.shape[0])

    log_weights_k = jax.nn.log_softmax(weights_pre_softmax_k).astype(jnp.float32)
    f_k = jax.nn.sigmoid(f_pre_sigmoid_k)
    log_f_k = jnp.log(f_k).astype(jnp.float32)
    log_1mf_k = jnp.log1p(-f_k).astype(jnp.float32)

    alpha = jnp.exp(alpha_pre_exp)
    beta = jnp.exp(beta_pre_exp)
    # fold log-weight of the beta-binomial component + its normalizing constant
    bb_scalar = (log_weights_k[K - 1]
                 + gammaln(alpha + beta) - gammaln(alpha) - gammaln(beta))
    ab = jnp.stack([alpha, beta, bb_scalar]).astype(jnp.float32)

    rows_pad, r_tile = _pick_tiling(B)
    total = rows_pad * 128
    # pad with (depth=2, alt=1) so all lgamma arguments stay positive;
    # padded outputs are sliced off below.
    d = jnp.full((total,), 2.0, jnp.float32).at[:B].set(
        depths_b.astype(jnp.float32)).reshape(rows_pad, 128)
    a = jnp.full((total,), 1.0, jnp.float32).at[:B].set(
        alt_counts_b.astype(jnp.float32)).reshape(rows_pad, 128)

    kernel = functools.partial(_somatic_spectrum_kernel, K=K)
    out = pl.pallas_call(
        kernel,
        out_shape=jax.ShapeDtypeStruct((rows_pad, 128), jnp.float32),
        grid=(rows_pad // r_tile,),
        in_specs=[
            pl.BlockSpec(memory_space=pltpu.MemorySpace.SMEM),   # log weights (K,)
            pl.BlockSpec(memory_space=pltpu.MemorySpace.SMEM),   # log f (K-1,)
            pl.BlockSpec(memory_space=pltpu.MemorySpace.SMEM),   # log(1-f) (K-1,)
            pl.BlockSpec(memory_space=pltpu.MemorySpace.SMEM),   # alpha, beta, bb_scalar (3,)
            pl.BlockSpec((r_tile, 128), lambda i: (i, 0)),       # depths
            pl.BlockSpec((r_tile, 128), lambda i: (i, 0)),       # alt counts
        ],
        out_specs=pl.BlockSpec((r_tile, 128), lambda i: (i, 0)),
        compiler_params=pltpu.CompilerParams(
            dimension_semantics=("parallel",)),
    )(log_weights_k, log_f_k, log_1mf_k, ab, d, a)

    return out.reshape(total)[:B]


# ---------------------------------------------------------------------------
# Pure-JAX reference (mirrors the PyTorch forward exactly)
# ---------------------------------------------------------------------------
def reference_forward(weights_pre_softmax_k, f_pre_sigmoid_k,
                      alpha_pre_exp, beta_pre_exp, depths_b, alt_counts_b):
    d = depths_b.astype(jnp.float32)
    a = alt_counts_b.astype(jnp.float32)
    f_k = jax.nn.sigmoid(f_pre_sigmoid_k)
    comb = gammaln(d + 1.0) - gammaln(a + 1.0) - gammaln(d - a + 1.0)
    binom_bk = (a[:, None] * jnp.log(f_k)[None, :]
                + (d - a)[:, None] * jnp.log1p(-f_k)[None, :]
                + comb[:, None])
    alpha = jnp.exp(alpha_pre_exp)
    beta = jnp.exp(beta_pre_exp)
    bb_b = (gammaln(a + alpha) + gammaln(d - a + beta) + gammaln(alpha + beta)
            - gammaln(d + alpha + beta) - gammaln(alpha) - gammaln(beta) + comb)
    lik_bk = jnp.concatenate([binom_bk, bb_b[:, None]], axis=1)
    log_w = jax.nn.log_softmax(weights_pre_softmax_k)
    return jax.scipy.special.logsumexp(log_w[None, :] + lik_bk, axis=1)


if __name__ == "__main__":
    K = 4       # num_components
    B = 8       # batch size

    # deterministic parameter init, matching SomaticSpectrum.__init__
    weights_pre_softmax_k = jnp.ones((K,), jnp.float32).at[-1].set(3.0)
    f_pre_sigmoid_k = (4.0 * jnp.arange(K - 1, dtype=jnp.float32) / (K - 1)) - 2.0
    alpha_pre_exp = jnp.float32(1.0)
    beta_pre_exp = jnp.float32(1.0)

    # deterministic example inputs: integer depths in [10, 100), alt counts <= depth
    key = jax.random.PRNGKey(0)
    k1, k2 = jax.random.split(key)
    depths_b = jax.random.randint(k1, (B,), 10, 100).astype(jnp.float32)
    frac = jax.random.uniform(k2, (B,))
    alt_counts_b = jnp.floor(frac * depths_b).astype(jnp.float32)

    out = somatic_spectrum_forward(weights_pre_softmax_k, f_pre_sigmoid_k,
                                   alpha_pre_exp, beta_pre_exp,
                                   depths_b, alt_counts_b)
    out = jax.block_until_ready(out)

    ref = reference_forward(weights_pre_softmax_k, f_pre_sigmoid_k,
                            alpha_pre_exp, beta_pre_exp,
                            depths_b, alt_counts_b)
    np.testing.assert_allclose(np.asarray(out), np.asarray(ref),
                               rtol=2e-3, atol=2e-3)

    # TODO(synk): the rational Lanczos lgamma assumes arguments > ~0.5 and keeps
    # intermediates < f32 max only for depths up to ~3e4; add a reflection/guard
    # or switch to the summed-fraction form if learned alpha/beta can drop below
    # 0.5 or depths exceed that range.
    print("KERNEL_OK")
</pallas_src>

<mosaic_0001>
module attributes {stable_mosaic.version = 11 : i64} {
  func.func @_somatic_spectrum_kernel(%arg0: i32, %arg1: memref<4xf32, #tpu.memory_space<smem>>, %arg2: memref<3xf32, #tpu.memory_space<smem>>, %arg3: memref<3xf32, #tpu.memory_space<smem>>, %arg4: memref<3xf32, #tpu.memory_space<smem>>, %arg5: memref<8x128xf32, #tpu.memory_space<vmem>>, %arg6: memref<8x128xf32, #tpu.memory_space<vmem>>, %arg7: memref<8x128xf32, #tpu.memory_space<vmem>>) attributes {dimension_semantics = [#tpu.dimension_semantics<parallel>], iteration_bounds = array<i64: 1>, scalar_prefetch = 0 : i64, scratch_operands = 0 : i64, tpu.core_type = #tpu.core_type<tc>, window_params = [{transform_indices = @transform_0, window_bounds = array<i64: 4>}, {transform_indices = @transform_1, window_bounds = array<i64: 3>}, {transform_indices = @transform_2, window_bounds = array<i64: 3>}, {transform_indices = @transform_3, window_bounds = array<i64: 3>}, {transform_indices = @transform_4, window_bounds = array<i64: 8, 128>}, {transform_indices = @transform_5, window_bounds = array<i64: 8, 128>}, {transform_indices = @transform_6, window_bounds = array<i64: 8, 128>}]} {
    %c0 = arith.constant 0 : index
    %c0_0 = arith.constant 0 : index
    %0 = vector.load %arg5[%c0, %c0_0] : memref<8x128xf32, #tpu.memory_space<vmem>>, vector<8x128xf32>
    %c0_1 = arith.constant 0 : index
    %c0_2 = arith.constant 0 : index
    %1 = vector.load %arg6[%c0_1, %c0_2] : memref<8x128xf32, #tpu.memory_space<vmem>>, vector<8x128xf32>
    %2 = arith.subf %0, %1 : vector<8x128xf32>
    %c0_3 = arith.constant 0 : index
    %3 = memref.load %arg4[%c0_3] : memref<3xf32, #tpu.memory_space<smem>>
    %c1 = arith.constant 1 : index
    %4 = memref.load %arg4[%c1] : memref<3xf32, #tpu.memory_space<smem>>
    %c2 = arith.constant 2 : index
    %5 = memref.load %arg4[%c2] : memref<3xf32, #tpu.memory_space<smem>>
    %cst = arith.constant 1.000000e+00 : f32
    %6 = vector.broadcast %cst : f32 to vector<8x128xf32>
    %7 = arith.addf %0, %6 : vector<8x128xf32>
    %cst_4 = arith.constant 1.000000e+00 : f32
    %8 = vector.broadcast %cst_4 : f32 to vector<8x128xf32>
    %9 = arith.subf %7, %8 : vector<8x128xf32>
    %cst_5 = arith.constant 1.000000e+00 : f32
    %10 = vector.broadcast %cst_5 : f32 to vector<8x128xf32>
    %11 = arith.mulf %10, %9 : vector<8x128xf32>
    %cst_6 = arith.constant 60.4583321 : f32
    %12 = vector.broadcast %cst_6 : f32 to vector<8x128xf32>
    %13 = arith.addf %11, %12 : vector<8x128xf32>
    %14 = arith.mulf %13, %9 : vector<8x128xf32>
    %cst_7 = arith.constant 1599.04248 : f32
    %15 = vector.broadcast %cst_7 : f32 to vector<8x128xf32>
    %16 = arith.addf %14, %15 : vector<8x128xf32>
    %17 = arith.mulf %16, %9 : vector<8x128xf32>
    %cst_8 = arith.constant 24165.5098 : f32
    %18 = vector.broadcast %cst_8 : f32 to vector<8x128xf32>
    %19 = arith.addf %17, %18 : vector<8x128xf32>
    %20 = arith.mulf %19, %9 : vector<8x128xf32>
    %cst_9 = arith.constant 228235.219 : f32
    %21 = vector.broadcast %cst_9 : f32 to vector<8x128xf32>
    %22 = arith.addf %20, %21 : vector<8x128xf32>
    %23 = arith.mulf %22, %9 : vector<8x128xf32>
    %cst_10 = arith.constant 1379496.25 : f32
    %24 = vector.broadcast %cst_10 : f32 to vector<8x128xf32>
    %25 = arith.addf %23, %24 : vector<8x128xf32>
    %26 = arith.mulf %25, %9 : vector<8x128xf32>
    %cst_11 = arith.constant 0x4A9F05EA : f32
    %27 = vector.broadcast %cst_11 : f32 to vector<8x128xf32>
    %28 = arith.addf %26, %27 : vector<8x128xf32>
    %29 = arith.mulf %28, %9 : vector<8x128xf32>
    %cst_12 = arith.constant 0x4B2B9D51 : f32
    %30 = vector.broadcast %cst_12 : f32 to vector<8x128xf32>
    %31 = arith.addf %29, %30 : vector<8x128xf32>
    %32 = arith.mulf %31, %9 : vector<8x128xf32>
    %cst_13 = arith.constant 0x4B220ADA : f32
    %33 = vector.broadcast %cst_13 : f32 to vector<8x128xf32>
    %34 = arith.addf %32, %33 : vector<8x128xf32>
    %cst_14 = arith.constant 1.000000e+00 : f32
    %35 = vector.broadcast %cst_14 : f32 to vector<8x128xf32>
    %36 = arith.mulf %35, %9 : vector<8x128xf32>
    %cst_15 = arith.constant 3.600000e+01 : f32
    %37 = vector.broadcast %cst_15 : f32 to vector<8x128xf32>
    %38 = arith.addf %36, %37 : vector<8x128xf32>
    %39 = arith.mulf %38, %9 : vector<8x128xf32>
    %cst_16 = arith.constant 5.460000e+02 : f32
    %40 = vector.broadcast %cst_16 : f32 to vector<8x128xf32>
    %41 = arith.addf %39, %40 : vector<8x128xf32>
    %42 = arith.mulf %41, %9 : vector<8x128xf32>
    %cst_17 = arith.constant 4.536000e+03 : f32
    %43 = vector.broadcast %cst_17 : f32 to vector<8x128xf32>
    %44 = arith.addf %42, %43 : vector<8x128xf32>
    %45 = arith.mulf %44, %9 : vector<8x128xf32>
    %cst_18 = arith.constant 2.244900e+04 : f32
    %46 = vector.broadcast %cst_18 : f32 to vector<8x128xf32>
    %47 = arith.addf %45, %46 : vector<8x128xf32>
    %48 = arith.mulf %47, %9 : vector<8x128xf32>
    %cst_19 = arith.constant 6.728400e+04 : f32
    %49 = vector.broadcast %cst_19 : f32 to vector<8x128xf32>
    %50 = arith.addf %48, %49 : vector<8x128xf32>
    %51 = arith.mulf %50, %9 : vector<8x128xf32>
    %cst_20 = arith.constant 1.181240e+05 : f32
    %52 = vector.broadcast %cst_20 : f32 to vector<8x128xf32>
    %53 = arith.addf %51, %52 : vector<8x128xf32>
    %54 = arith.mulf %53, %9 : vector<8x128xf32>
    %cst_21 = arith.constant 1.095840e+05 : f32
    %55 = vector.broadcast %cst_21 : f32 to vector<8x128xf32>
    %56 = arith.addf %54, %55 : vector<8x128xf32>
    %57 = arith.mulf %56, %9 : vector<8x128xf32>
    %cst_22 = arith.constant 4.032000e+04 : f32
    %58 = vector.broadcast %cst_22 : f32 to vector<8x128xf32>
    %59 = arith.addf %57, %58 : vector<8x128xf32>
    %60 = arith.divf %34, %59 : vector<8x128xf32>
    %cst_23 = arith.constant 7.500000e+00 : f32
    %61 = vector.broadcast %cst_23 : f32 to vector<8x128xf32>
    %62 = arith.addf %9, %61 : vector<8x128xf32>
    %cst_24 = arith.constant 5.000000e-01 : f32
    %63 = vector.broadcast %cst_24 : f32 to vector<8x128xf32>
    %64 = arith.addf %9, %63 : vector<8x128xf32>
    %65 = math.log %62 : vector<8x128xf32>
    %66 = arith.mulf %64, %65 : vector<8x128xf32>
    %cst_25 = arith.constant 0.918938517 : f32
    %67 = vector.broadcast %cst_25 : f32 to vector<8x128xf32>
    %68 = arith.addf %67, %66 : vector<8x128xf32>
    %69 = arith.subf %68, %62 : vector<8x128xf32>
    %70 = math.log %60 : vector<8x128xf32>
    %71 = arith.addf %69, %70 : vector<8x128xf32>
    %cst_26 = arith.constant 1.000000e+00 : f32
    %72 = vector.broadcast %cst_26 : f32 to vector<8x128xf32>
    %73 = arith.addf %1, %72 : vector<8x128xf32>
    %cst_27 = arith.constant 1.000000e+00 : f32
    %74 = vector.broadcast %cst_27 : f32 to vector<8x128xf32>
    %75 = arith.subf %73, %74 : vector<8x128xf32>
    %cst_28 = arith.constant 1.000000e+00 : f32
    %76 = vector.broadcast %cst_28 : f32 to vector<8x128xf32>
    %77 = arith.mulf %76, %75 : vector<8x128xf32>
    %cst_29 = arith.constant 60.4583321 : f32
    %78 = vector.broadcast %cst_29 : f32 to vector<8x128xf32>
    %79 = arith.addf %77, %78 : vector<8x128xf32>
    %80 = arith.mulf %79, %75 : vector<8x128xf32>
    %cst_30 = arith.constant 1599.04248 : f32
    %81 = vector.broadcast %cst_30 : f32 to vector<8x128xf32>
    %82 = arith.addf %80, %81 : vector<8x128xf32>
    %83 = arith.mulf %82, %75 : vector<8x128xf32>
    %cst_31 = arith.constant 24165.5098 : f32
    %84 = vector.broadcast %cst_31 : f32 to vector<8x128xf32>
    %85 = arith.addf %83, %84 : vector<8x128xf32>
    %86 = arith.mulf %85, %75 : vector<8x128xf32>
    %cst_32 = arith.constant 228235.219 : f32
    %87 = vector.broadcast %cst_32 : f32 to vector<8x128xf32>
    %88 = arith.addf %86, %87 : vector<8x128xf32>
    %89 = arith.mulf %88, %75 : vector<8x128xf32>
    %cst_33 = arith.constant 1379496.25 : f32
    %90 = vector.broadcast %cst_33 : f32 to vector<8x128xf32>
    %91 = arith.addf %89, %90 : vector<8x128xf32>
    %92 = arith.mulf %91, %75 : vector<8x128xf32>
    %cst_34 = arith.constant 0x4A9F05EA : f32
    %93 = vector.broadcast %cst_34 : f32 to vector<8x128xf32>
    %94 = arith.addf %92, %93 : vector<8x128xf32>
    %95 = arith.mulf %94, %75 : vector<8x128xf32>
    %cst_35 = arith.constant 0x4B2B9D51 : f32
    %96 = vector.broadcast %cst_35 : f32 to vector<8x128xf32>
    %97 = arith.addf %95, %96 : vector<8x128xf32>
    %98 = arith.mulf %97, %75 : vector<8x128xf32>
    %cst_36 = arith.constant 0x4B220ADA : f32
    %99 = vector.broadcast %cst_36 : f32 to vector<8x128xf32>
    %100 = arith.addf %98, %99 : vector<8x128xf32>
    %cst_37 = arith.constant 1.000000e+00 : f32
    %101 = vector.broadcast %cst_37 : f32 to vector<8x128xf32>
    %102 = arith.mulf %101, %75 : vector<8x128xf32>
    %cst_38 = arith.constant 3.600000e+01 : f32
    %103 = vector.broadcast %cst_38 : f32 to vector<8x128xf32>
    %104 = arith.addf %102, %103 : vector<8x128xf32>
    %105 = arith.mulf %104, %75 : vector<8x128xf32>
    %cst_39 = arith.constant 5.460000e+02 : f32
    %106 = vector.broadcast %cst_39 : f32 to vector<8x128xf32>
    %107 = arith.addf %105, %106 : vector<8x128xf32>
    %108 = arith.mulf %107, %75 : vector<8x128xf32>
    %cst_40 = arith.constant 4.536000e+03 : f32
    %109 = vector.broadcast %cst_40 : f32 to vector<8x128xf32>
    %110 = arith.addf %108, %109 : vector<8x128xf32>
    %111 = arith.mulf %110, %75 : vector<8x128xf32>
    %cst_41 = arith.constant 2.244900e+04 : f32
    %112 = vector.broadcast %cst_41 : f32 to vector<8x128xf32>
    %113 = arith.addf %111, %112 : vector<8x128xf32>
    %114 = arith.mulf %113, %75 : vector<8x128xf32>
    %cst_42 = arith.constant 6.728400e+04 : f32
    %115 = vector.broadcast %cst_42 : f32 to vector<8x128xf32>
    %116 = arith.addf %114, %115 : vector<8x128xf32>
    %117 = arith.mulf %116, %75 : vector<8x128xf32>
    %cst_43 = arith.constant 1.181240e+05 : f32
    %118 = vector.broadcast %cst_43 : f32 to vector<8x128xf32>
    %119 = arith.addf %117, %118 : vector<8x128xf32>
    %120 = arith.mulf %119, %75 : vector<8x128xf32>
    %cst_44 = arith.constant 1.095840e+05 : f32
    %121 = vector.broadcast %cst_44 : f32 to vector<8x128xf32>
    %122 = arith.addf %120, %121 : vector<8x128xf32>
    %123 = arith.mulf %122, %75 : vector<8x128xf32>
    %cst_45 = arith.constant 4.032000e+04 : f32
    %124 = vector.broadcast %cst_45 : f32 to vector<8x128xf32>
    %125 = arith.addf %123, %124 : vector<8x128xf32>
    %126 = arith.divf %100, %125 : vector<8x128xf32>
    %cst_46 = arith.constant 7.500000e+00 : f32
    %127 = vector.broadcast %cst_46 : f32 to vector<8x128xf32>
    %128 = arith.addf %75, %127 : vector<8x128xf32>
    %cst_47 = arith.constant 5.000000e-01 : f32
    %129 = vector.broadcast %cst_47 : f32 to vector<8x128xf32>
    %130 = arith.addf %75, %129 : vector<8x128xf32>
    %131 = math.log %128 : vector<8x128xf32>
    %132 = arith.mulf %130, %131 : vector<8x128xf32>
    %cst_48 = arith.constant 0.918938517 : f32
    %133 = vector.broadcast %cst_48 : f32 to vector<8x128xf32>
    %134 = arith.addf %133, %132 : vector<8x128xf32>
    %135 = arith.subf %134, %128 : vector<8x128xf32>
    %136 = math.log %126 : vector<8x128xf32>
    %137 = arith.addf %135, %136 : vector<8x128xf32>
    %138 = arith.subf %71, %137 : vector<8x128xf32>
    %cst_49 = arith.constant 1.000000e+00 : f32
    %139 = vector.broadcast %cst_49 : f32 to vector<8x128xf32>
    %140 = arith.addf %2, %139 : vector<8x128xf32>
    %cst_50 = arith.constant 1.000000e+00 : f32
    %141 = vector.broadcast %cst_50 : f32 to vector<8x128xf32>
    %142 = arith.subf %140, %141 : vector<8x128xf32>
    %cst_51 = arith.constant 1.000000e+00 : f32
    %143 = vector.broadcast %cst_51 : f32 to vector<8x128xf32>
    %144 = arith.mulf %143, %142 : vector<8x128xf32>
    %cst_52 = arith.constant 60.4583321 : f32
    %145 = vector.broadcast %cst_52 : f32 to vector<8x128xf32>
    %146 = arith.addf %144, %145 : vector<8x128xf32>
    %147 = arith.mulf %146, %142 : vector<8x128xf32>
    %cst_53 = arith.constant 1599.04248 : f32
    %148 = vector.broadcast %cst_53 : f32 to vector<8x128xf32>
    %149 = arith.addf %147, %148 : vector<8x128xf32>
    %150 = arith.mulf %149, %142 : vector<8x128xf32>
    %cst_54 = arith.constant 24165.5098 : f32
    %151 = vector.broadcast %cst_54 : f32 to vector<8x128xf32>
    %152 = arith.addf %150, %151 : vector<8x128xf32>
    %153 = arith.mulf %152, %142 : vector<8x128xf32>
    %cst_55 = arith.constant 228235.219 : f32
    %154 = vector.broadcast %cst_55 : f32 to vector<8x128xf32>
    %155 = arith.addf %153, %154 : vector<8x128xf32>
    %156 = arith.mulf %155, %142 : vector<8x128xf32>
    %cst_56 = arith.constant 1379496.25 : f32
    %157 = vector.broadcast %cst_56 : f32 to vector<8x128xf32>
    %158 = arith.addf %156, %157 : vector<8x128xf32>
    %159 = arith.mulf %158, %142 : vector<8x128xf32>
    %cst_57 = arith.constant 0x4A9F05EA : f32
    %160 = vector.broadcast %cst_57 : f32 to vector<8x128xf32>
    %161 = arith.addf %159, %160 : vector<8x128xf32>
    %162 = arith.mulf %161, %142 : vector<8x128xf32>
    %cst_58 = arith.constant 0x4B2B9D51 : f32
    %163 = vector.broadcast %cst_58 : f32 to vector<8x128xf32>
    %164 = arith.addf %162, %163 : vector<8x128xf32>
    %165 = arith.mulf %164, %142 : vector<8x128xf32>
    %cst_59 = arith.constant 0x4B220ADA : f32
    %166 = vector.broadcast %cst_59 : f32 to vector<8x128xf32>
    %167 = arith.addf %165, %166 : vector<8x128xf32>
    %cst_60 = arith.constant 1.000000e+00 : f32
    %168 = vector.broadcast %cst_60 : f32 to vector<8x128xf32>
    %169 = arith.mulf %168, %142 : vector<8x128xf32>
    %cst_61 = arith.constant 3.600000e+01 : f32
    %170 = vector.broadcast %cst_61 : f32 to vector<8x128xf32>
    %171 = arith.addf %169, %170 : vector<8x128xf32>
    %172 = arith.mulf %171, %142 : vector<8x128xf32>
    %cst_62 = arith.constant 5.460000e+02 : f32
    %173 = vector.broadcast %cst_62 : f32 to vector<8x128xf32>
    %174 = arith.addf %172, %173 : vector<8x128xf32>
    %175 = arith.mulf %174, %142 : vector<8x128xf32>
    %cst_63 = arith.constant 4.536000e+03 : f32
    %176 = vector.broadcast %cst_63 : f32 to vector<8x128xf32>
    %177 = arith.addf %175, %176 : vector<8x128xf32>
    %178 = arith.mulf %177, %142 : vector<8x128xf32>
    %cst_64 = arith.constant 2.244900e+04 : f32
    %179 = vector.broadcast %cst_64 : f32 to vector<8x128xf32>
    %180 = arith.addf %178, %179 : vector<8x128xf32>
    %181 = arith.mulf %180, %142 : vector<8x128xf32>
    %cst_65 = arith.constant 6.728400e+04 : f32
    %182 = vector.broadcast %cst_65 : f32 to vector<8x128xf32>
    %183 = arith.addf %181, %182 : vector<8x128xf32>
    %184 = arith.mulf %183, %142 : vector<8x128xf32>
    %cst_66 = arith.constant 1.181240e+05 : f32
    %185 = vector.broadcast %cst_66 : f32 to vector<8x128xf32>
    %186 = arith.addf %184, %185 : vector<8x128xf32>
    %187 = arith.mulf %186, %142 : vector<8x128xf32>
    %cst_67 = arith.constant 1.095840e+05 : f32
    %188 = vector.broadcast %cst_67 : f32 to vector<8x128xf32>
    %189 = arith.addf %187, %188 : vector<8x128xf32>
    %190 = arith.mulf %189, %142 : vector<8x128xf32>
    %cst_68 = arith.constant 4.032000e+04 : f32
    %191 = vector.broadcast %cst_68 : f32 to vector<8x128xf32>
    %192 = arith.addf %190, %191 : vector<8x128xf32>
    %193 = arith.divf %167, %192 : vector<8x128xf32>
    %cst_69 = arith.constant 7.500000e+00 : f32
    %194 = vector.broadcast %cst_69 : f32 to vector<8x128xf32>
    %195 = arith.addf %142, %194 : vector<8x128xf32>
    %cst_70 = arith.constant 5.000000e-01 : f32
    %196 = vector.broadcast %cst_70 : f32 to vector<8x128xf32>
    %197 = arith.addf %142, %196 : vector<8x128xf32>
    %198 = math.log %195 : vector<8x128xf32>
    %199 = arith.mulf %197, %198 : vector<8x128xf32>
    %cst_71 = arith.constant 0.918938517 : f32
    %200 = vector.broadcast %cst_71 : f32 to vector<8x128xf32>
    %201 = arith.addf %200, %199 : vector<8x128xf32>
    %202 = arith.subf %201, %195 : vector<8x128xf32>
    %203 = math.log %193 : vector<8x128xf32>
    %204 = arith.addf %202, %203 : vector<8x128xf32>
    %205 = arith.subf %138, %204 : vector<8x128xf32>
    %c0_72 = arith.constant 0 : index
    %206 = memref.load %arg2[%c0_72] : memref<3xf32, #tpu.memory_space<smem>>
    %207 = vector.broadcast %206 : f32 to vector<8x128xf32>
    %208 = arith.mulf %1, %207 : vector<8x128xf32>
    %c0_73 = arith.constant 0 : index
    %209 = memref.load %arg3[%c0_73] : memref<3xf32, #tpu.memory_space<smem>>
    %210 = vector.broadcast %209 : f32 to vector<8x128xf32>
    %211 = arith.mulf %2, %210 : vector<8x128xf32>
    %212 = arith.addf %208, %211 : vector<8x128xf32>
    %c0_74 = arith.constant 0 : index
    %213 = memref.load %arg1[%c0_74] : memref<4xf32, #tpu.memory_space<smem>>
    %214 = vector.broadcast %213 : f32 to vector<8x128xf32>
    %215 = arith.addf %212, %214 : vector<8x128xf32>
    %c1_75 = arith.constant 1 : index
    %216 = memref.load %arg2[%c1_75] : memref<3xf32, #tpu.memory_space<smem>>
    %217 = vector.broadcast %216 : f32 to vector<8x128xf32>
    %218 = arith.mulf %1, %217 : vector<8x128xf32>
    %c1_76 = arith.constant 1 : index
    %219 = memref.load %arg3[%c1_76] : memref<3xf32, #tpu.memory_space<smem>>
    %220 = vector.broadcast %219 : f32 to vector<8x128xf32>
    %221 = arith.mulf %2, %220 : vector<8x128xf32>
    %222 = arith.addf %218, %221 : vector<8x128xf32>
    %c1_77 = arith.constant 1 : index
    %223 = memref.load %arg1[%c1_77] : memref<4xf32, #tpu.memory_space<smem>>
    %224 = vector.broadcast %223 : f32 to vector<8x128xf32>
    %225 = arith.addf %222, %224 : vector<8x128xf32>
    %c2_78 = arith.constant 2 : index
    %226 = memref.load %arg2[%c2_78] : memref<3xf32, #tpu.memory_space<smem>>
    %227 = vector.broadcast %226 : f32 to vector<8x128xf32>
    %228 = arith.mulf %1, %227 : vector<8x128xf32>
    %c2_79 = arith.constant 2 : index
    %229 = memref.load %arg3[%c2_79] : memref<3xf32, #tpu.memory_space<smem>>
    %230 = vector.broadcast %229 : f32 to vector<8x128xf32>
    %231 = arith.mulf %2, %230 : vector<8x128xf32>
    %232 = arith.addf %228, %231 : vector<8x128xf32>
    %c2_80 = arith.constant 2 : index
    %233 = memref.load %arg1[%c2_80] : memref<4xf32, #tpu.memory_space<smem>>
    %234 = vector.broadcast %233 : f32 to vector<8x128xf32>
    %235 = arith.addf %232, %234 : vector<8x128xf32>
    %236 = vector.broadcast %3 : f32 to vector<8x128xf32>
    %237 = arith.addf %1, %236 : vector<8x128xf32>
    %cst_81 = arith.constant 1.000000e+00 : f32
    %238 = vector.broadcast %cst_81 : f32 to vector<8x128xf32>
    %239 = arith.subf %237, %238 : vector<8x128xf32>
    %cst_82 = arith.constant 1.000000e+00 : f32
    %240 = vector.broadcast %cst_82 : f32 to vector<8x128xf32>
    %241 = arith.mulf %240, %239 : vector<8x128xf32>
    %cst_83 = arith.constant 60.4583321 : f32
    %242 = vector.broadcast %cst_83 : f32 to vector<8x128xf32>
    %243 = arith.addf %241, %242 : vector<8x128xf32>
    %244 = arith.mulf %243, %239 : vector<8x128xf32>
    %cst_84 = arith.constant 1599.04248 : f32
    %245 = vector.broadcast %cst_84 : f32 to vector<8x128xf32>
    %246 = arith.addf %244, %245 : vector<8x128xf32>
    %247 = arith.mulf %246, %239 : vector<8x128xf32>
    %cst_85 = arith.constant 24165.5098 : f32
    %248 = vector.broadcast %cst_85 : f32 to vector<8x128xf32>
    %249 = arith.addf %247, %248 : vector<8x128xf32>
    %250 = arith.mulf %249, %239 : vector<8x128xf32>
    %cst_86 = arith.constant 228235.219 : f32
    %251 = vector.broadcast %cst_86 : f32 to vector<8x128xf32>
    %252 = arith.addf %250, %251 : vector<8x128xf32>
    %253 = arith.mulf %252, %239 : vector<8x128xf32>
    %cst_87 = arith.constant 1379496.25 : f32
    %254 = vector.broadcast %cst_87 : f32 to vector<8x128xf32>
    %255 = arith.addf %253, %254 : vector<8x128xf32>
    %256 = arith.mulf %255, %239 : vector<8x128xf32>
    %cst_88 = arith.constant 0x4A9F05EA : f32
    %257 = vector.broadcast %cst_88 : f32 to vector<8x128xf32>
    %258 = arith.addf %256, %257 : vector<8x128xf32>
    %259 = arith.mulf %258, %239 : vector<8x128xf32>
    %cst_89 = arith.constant 0x4B2B9D51 : f32
    %260 = vector.broadcast %cst_89 : f32 to vector<8x128xf32>
    %261 = arith.addf %259, %260 : vector<8x128xf32>
    %262 = arith.mulf %261, %239 : vector<8x128xf32>
    %cst_90 = arith.constant 0x4B220ADA : f32
    %263 = vector.broadcast %cst_90 : f32 to vector<8x128xf32>
    %264 = arith.addf %262, %263 : vector<8x128xf32>
    %cst_91 = arith.constant 1.000000e+00 : f32
    %265 = vector.broadcast %cst_91 : f32 to vector<8x128xf32>
    %266 = arith.mulf %265, %239 : vector<8x128xf32>
    %cst_92 = arith.constant 3.600000e+01 : f32
    %267 = vector.broadcast %cst_92 : f32 to vector<8x128xf32>
    %268 = arith.addf %266, %267 : vector<8x128xf32>
    %269 = arith.mulf %268, %239 : vector<8x128xf32>
    %cst_93 = arith.constant 5.460000e+02 : f32
    %270 = vector.broadcast %cst_93 : f32 to vector<8x128xf32>
    %271 = arith.addf %269, %270 : vector<8x128xf32>
    %272 = arith.mulf %271, %239 : vector<8x128xf32>
    %cst_94 = arith.constant 4.536000e+03 : f32
    %273 = vector.broadcast %cst_94 : f32 to vector<8x128xf32>
    %274 = arith.addf %272, %273 : vector<8x128xf32>
    %275 = arith.mulf %274, %239 : vector<8x128xf32>
    %cst_95 = arith.constant 2.244900e+04 : f32
    %276 = vector.broadcast %cst_95 : f32 to vector<8x128xf32>
    %277 = arith.addf %275, %276 : vector<8x128xf32>
    %278 = arith.mulf %277, %239 : vector<8x128xf32>
    %cst_96 = arith.constant 6.728400e+04 : f32
    %279 = vector.broadcast %cst_96 : f32 to vector<8x128xf32>
    %280 = arith.addf %278, %279 : vector<8x128xf32>
    %281 = arith.mulf %280, %239 : vector<8x128xf32>
    %cst_97 = arith.constant 1.181240e+05 : f32
    %282 = vector.broadcast %cst_97 : f32 to vector<8x128xf32>
    %283 = arith.addf %281, %282 : vector<8x128xf32>
    %284 = arith.mulf %283, %239 : vector<8x128xf32>
    %cst_98 = arith.constant 1.095840e+05 : f32
    %285 = vector.broadcast %cst_98 : f32 to vector<8x128xf32>
    %286 = arith.addf %284, %285 : vector<8x128xf32>
    %287 = arith.mulf %286, %239 : vector<8x128xf32>
    %cst_99 = arith.constant 4.032000e+04 : f32
    %288 = vector.broadcast %cst_99 : f32 to vector<8x128xf32>
    %289 = arith.addf %287, %288 : vector<8x128xf32>
    %290 = arith.divf %264, %289 : vector<8x128xf32>
    %cst_100 = arith.constant 7.500000e+00 : f32
    %291 = vector.broadcast %cst_100 : f32 to vector<8x128xf32>
    %292 = arith.addf %239, %291 : vector<8x128xf32>
    %cst_101 = arith.constant 5.000000e-01 : f32
    %293 = vector.broadcast %cst_101 : f32 to vector<8x128xf32>
    %294 = arith.addf %239, %293 : vector<8x128xf32>
    %295 = math.log %292 : vector<8x128xf32>
    %296 = arith.mulf %294, %295 : vector<8x128xf32>
    %cst_102 = arith.constant 0.918938517 : f32
    %297 = vector.broadcast %cst_102 : f32 to vector<8x128xf32>
    %298 = arith.addf %297, %296 : vector<8x128xf32>
    %299 = arith.subf %298, %292 : vector<8x128xf32>
    %300 = math.log %290 : vector<8x128xf32>
    %301 = arith.addf %299, %300 : vector<8x128xf32>
    %302 = vector.broadcast %4 : f32 to vector<8x128xf32>
    %303 = arith.addf %2, %302 : vector<8x128xf32>
    %cst_103 = arith.constant 1.000000e+00 : f32
    %304 = vector.broadcast %cst_103 : f32 to vector<8x128xf32>
    %305 = arith.subf %303, %304 : vector<8x128xf32>
    %cst_104 = arith.constant 1.000000e+00 : f32
    %306 = vector.broadcast %cst_104 : f32 to vector<8x128xf32>
    %307 = arith.mulf %306, %305 : vector<8x128xf32>
    %cst_105 = arith.constant 60.4583321 : f32
    %308 = vector.broadcast %cst_105 : f32 to vector<8x128xf32>
    %309 = arith.addf %307, %308 : vector<8x128xf32>
    %310 = arith.mulf %309, %305 : vector<8x128xf32>
    %cst_106 = arith.constant 1599.04248 : f32
    %311 = vector.broadcast %cst_106 : f32 to vector<8x128xf32>
    %312 = arith.addf %310, %311 : vector<8x128xf32>
    %313 = arith.mulf %312, %305 : vector<8x128xf32>
    %cst_107 = arith.constant 24165.5098 : f32
    %314 = vector.broadcast %cst_107 : f32 to vector<8x128xf32>
    %315 = arith.addf %313, %314 : vector<8x128xf32>
    %316 = arith.mulf %315, %305 : vector<8x128xf32>
    %cst_108 = arith.constant 228235.219 : f32
    %317 = vector.broadcast %cst_108 : f32 to vector<8x128xf32>
    %318 = arith.addf %316, %317 : vector<8x128xf32>
    %319 = arith.mulf %318, %305 : vector<8x128xf32>
    %cst_109 = arith.constant 1379496.25 : f32
    %320 = vector.broadcast %cst_109 : f32 to vector<8x128xf32>
    %321 = arith.addf %319, %320 : vector<8x128xf32>
    %322 = arith.mulf %321, %305 : vector<8x128xf32>
    %cst_110 = arith.constant 0x4A9F05EA : f32
    %323 = vector.broadcast %cst_110 : f32 to vector<8x128xf32>
    %324 = arith.addf %322, %323 : vector<8x128xf32>
    %325 = arith.mulf %324, %305 : vector<8x128xf32>
    %cst_111 = arith.constant 0x4B2B9D51 : f32
    %326 = vector.broadcast %cst_111 : f32 to vector<8x128xf32>
    %327 = arith.addf %325, %326 : vector<8x128xf32>
    %328 = arith.mulf %327, %305 : vector<8x128xf32>
    %cst_112 = arith.constant 0x4B220ADA : f32
    %329 = vector.broadcast %cst_112 : f32 to vector<8x128xf32>
    %330 = arith.addf %328, %329 : vector<8x128xf32>
    %cst_113 = arith.constant 1.000000e+00 : f32
    %331 = vector.broadcast %cst_113 : f32 to vector<8x128xf32>
    %332 = arith.mulf %331, %305 : vector<8x128xf32>
    %cst_114 = arith.constant 3.600000e+01 : f32
    %333 = vector.broadcast %cst_114 : f32 to vector<8x128xf32>
    %334 = arith.addf %332, %333 : vector<8x128xf32>
    %335 = arith.mulf %334, %305 : vector<8x128xf32>
    %cst_115 = arith.constant 5.460000e+02 : f32
    %336 = vector.broadcast %cst_115 : f32 to vector<8x128xf32>
    %337 = arith.addf %335, %336 : vector<8x128xf32>
    %338 = arith.mulf %337, %305 : vector<8x128xf32>
    %cst_116 = arith.constant 4.536000e+03 : f32
    %339 = vector.broadcast %cst_116 : f32 to vector<8x128xf32>
    %340 = arith.addf %338, %339 : vector<8x128xf32>
    %341 = arith.mulf %340, %305 : vector<8x128xf32>
    %cst_117 = arith.constant 2.244900e+04 : f32
    %342 = vector.broadcast %cst_117 : f32 to vector<8x128xf32>
    %343 = arith.addf %341, %342 : vector<8x128xf32>
    %344 = arith.mulf %343, %305 : vector<8x128xf32>
    %cst_118 = arith.constant 6.728400e+04 : f32
    %345 = vector.broadcast %cst_118 : f32 to vector<8x128xf32>
    %346 = arith.addf %344, %345 : vector<8x128xf32>
    %347 = arith.mulf %346, %305 : vector<8x128xf32>
    %cst_119 = arith.constant 1.181240e+05 : f32
    %348 = vector.broadcast %cst_119 : f32 to vector<8x128xf32>
    %349 = arith.addf %347, %348 : vector<8x128xf32>
    %350 = arith.mulf %349, %305 : vector<8x128xf32>
    %cst_120 = arith.constant 1.095840e+05 : f32
    %351 = vector.broadcast %cst_120 : f32 to vector<8x128xf32>
    %352 = arith.addf %350, %351 : vector<8x128xf32>
    %353 = arith.mulf %352, %305 : vector<8x128xf32>
    %cst_121 = arith.constant 4.032000e+04 : f32
    %354 = vector.broadcast %cst_121 : f32 to vector<8x128xf32>
    %355 = arith.addf %353, %354 : vector<8x128xf32>
    %356 = arith.divf %330, %355 : vector<8x128xf32>
    %cst_122 = arith.constant 7.500000e+00 : f32
    %357 = vector.broadcast %cst_122 : f32 to vector<8x128xf32>
    %358 = arith.addf %305, %357 : vector<8x128xf32>
    %cst_123 = arith.constant 5.000000e-01 : f32
    %359 = vector.broadcast %cst_123 : f32 to vector<8x128xf32>
    %360 = arith.addf %305, %359 : vector<8x128xf32>
    %361 = math.log %358 : vector<8x128xf32>
    %362 = arith.mulf %360, %361 : vector<8x128xf32>
    %cst_124 = arith.constant 0.918938517 : f32
    %363 = vector.broadcast %cst_124 : f32 to vector<8x128xf32>
    %364 = arith.addf %363, %362 : vector<8x128xf32>
    %365 = arith.subf %364, %358 : vector<8x128xf32>
    %366 = math.log %356 : vector<8x128xf32>
    %367 = arith.addf %365, %366 : vector<8x128xf32>
    %368 = arith.addf %301, %367 : vector<8x128xf32>
    %369 = vector.broadcast %3 : f32 to vector<8x128xf32>
    %370 = arith.addf %0, %369 : vector<8x128xf32>
    %371 = vector.broadcast %4 : f32 to vector<8x128xf32>
    %372 = arith.addf %370, %371 : vector<8x128xf32>
    %cst_125 = arith.constant 1.000000e+00 : f32
    %373 = vector.broadcast %cst_125 : f32 to vector<8x128xf32>
    %374 = arith.subf %372, %373 : vector<8x128xf32>
    %cst_126 = arith.constant 1.000000e+00 : f32
    %375 = vector.broadcast %cst_126 : f32 to vector<8x128xf32>
    %376 = arith.mulf %375, %374 : vector<8x128xf32>
    %cst_127 = arith.constant 60.4583321 : f32
    %377 = vector.broadcast %cst_127 : f32 to vector<8x128xf32>
    %378 = arith.addf %376, %377 : vector<8x128xf32>
    %379 = arith.mulf %378, %374 : vector<8x128xf32>
    %cst_128 = arith.constant 1599.04248 : f32
    %380 = vector.broadcast %cst_128 : f32 to vector<8x128xf32>
    %381 = arith.addf %379, %380 : vector<8x128xf32>
    %382 = arith.mulf %381, %374 : vector<8x128xf32>
    %cst_129 = arith.constant 24165.5098 : f32
    %383 = vector.broadcast %cst_129 : f32 to vector<8x128xf32>
    %384 = arith.addf %382, %383 : vector<8x128xf32>
    %385 = arith.mulf %384, %374 : vector<8x128xf32>
    %cst_130 = arith.constant 228235.219 : f32
    %386 = vector.broadcast %cst_130 : f32 to vector<8x128xf32>
    %387 = arith.addf %385, %386 : vector<8x128xf32>
    %388 = arith.mulf %387, %374 : vector<8x128xf32>
    %cst_131 = arith.constant 1379496.25 : f32
    %389 = vector.broadcast %cst_131 : f32 to vector<8x128xf32>
    %390 = arith.addf %388, %389 : vector<8x128xf32>
    %391 = arith.mulf %390, %374 : vector<8x128xf32>
    %cst_132 = arith.constant 0x4A9F05EA : f32
    %392 = vector.broadcast %cst_132 : f32 to vector<8x128xf32>
    %393 = arith.addf %391, %392 : vector<8x128xf32>
    %394 = arith.mulf %393, %374 : vector<8x128xf32>
    %cst_133 = arith.constant 0x4B2B9D51 : f32
    %395 = vector.broadcast %cst_133 : f32 to vector<8x128xf32>
    %396 = arith.addf %394, %395 : vector<8x128xf32>
    %397 = arith.mulf %396, %374 : vector<8x128xf32>
    %cst_134 = arith.constant 0x4B220ADA : f32
    %398 = vector.broadcast %cst_134 : f32 to vector<8x128xf32>
    %399 = arith.addf %397, %398 : vector<8x128xf32>
    %cst_135 = arith.constant 1.000000e+00 : f32
    %400 = vector.broadcast %cst_135 : f32 to vector<8x128xf32>
    %401 = arith.mulf %400, %374 : vector<8x128xf32>
    %cst_136 = arith.constant 3.600000e+01 : f32
    %402 = vector.broadcast %cst_136 : f32 to vector<8x128xf32>
    %403 = arith.addf %401, %402 : vector<8x128xf32>
    %404 = arith.mulf %403, %374 : vector<8x128xf32>
    %cst_137 = arith.constant 5.460000e+02 : f32
    %405 = vector.broadcast %cst_137 : f32 to vector<8x128xf32>
    %406 = arith.addf %404, %405 : vector<8x128xf32>
    %407 = arith.mulf %406, %374 : vector<8x128xf32>
    %cst_138 = arith.constant 4.536000e+03 : f32
    %408 = vector.broadcast %cst_138 : f32 to vector<8x128xf32>
    %409 = arith.addf %407, %408 : vector<8x128xf32>
    %410 = arith.mulf %409, %374 : vector<8x128xf32>
    %cst_139 = arith.constant 2.244900e+04 : f32
    %411 = vector.broadcast %cst_139 : f32 to vector<8x128xf32>
    %412 = arith.addf %410, %411 : vector<8x128xf32>
    %413 = arith.mulf %412, %374 : vector<8x128xf32>
    %cst_140 = arith.constant 6.728400e+04 : f32
    %414 = vector.broadcast %cst_140 : f32 to vector<8x128xf32>
    %415 = arith.addf %413, %414 : vector<8x128xf32>
    %416 = arith.mulf %415, %374 : vector<8x128xf32>
    %cst_141 = arith.constant 1.181240e+05 : f32
    %417 = vector.broadcast %cst_141 : f32 to vector<8x128xf32>
    %418 = arith.addf %416, %417 : vector<8x128xf32>
    %419 = arith.mulf %418, %374 : vector<8x128xf32>
    %cst_142 = arith.constant 1.095840e+05 : f32
    %420 = vector.broadcast %cst_142 : f32 to vector<8x128xf32>
    %421 = arith.addf %419, %420 : vector<8x128xf32>
    %422 = arith.mulf %421, %374 : vector<8x128xf32>
    %cst_143 = arith.constant 4.032000e+04 : f32
    %423 = vector.broadcast %cst_143 : f32 to vector<8x128xf32>
    %424 = arith.addf %422, %423 : vector<8x128xf32>
    %425 = arith.divf %399, %424 : vector<8x128xf32>
    %cst_144 = arith.constant 7.500000e+00 : f32
    %426 = vector.broadcast %cst_144 : f32 to vector<8x128xf32>
    %427 = arith.addf %374, %426 : vector<8x128xf32>
    %cst_145 = arith.constant 5.000000e-01 : f32
    %428 = vector.broadcast %cst_145 : f32 to vector<8x128xf32>
    %429 = arith.addf %374, %428 : vector<8x128xf32>
    %430 = math.log %427 : vector<8x128xf32>
    %431 = arith.mulf %429, %430 : vector<8x128xf32>
    %cst_146 = arith.constant 0.918938517 : f32
    %432 = vector.broadcast %cst_146 : f32 to vector<8x128xf32>
    %433 = arith.addf %432, %431 : vector<8x128xf32>
    %434 = arith.subf %433, %427 : vector<8x128xf32>
    %435 = math.log %425 : vector<8x128xf32>
    %436 = arith.addf %434, %435 : vector<8x128xf32>
    %437 = arith.subf %368, %436 : vector<8x128xf32>
    %438 = vector.broadcast %5 : f32 to vector<8x128xf32>
    %439 = arith.addf %437, %438 : vector<8x128xf32>
    %440 = arith.maximumf %215, %225 : vector<8x128xf32>
    %441 = arith.maximumf %440, %235 : vector<8x128xf32>
    %442 = arith.maximumf %441, %439 : vector<8x128xf32>
    %443 = arith.subf %215, %442 : vector<8x128xf32>
    %444 = math.exp %443 : vector<8x128xf32>
    %445 = arith.subf %225, %442 : vector<8x128xf32>
    %446 = math.exp %445 : vector<8x128xf32>
    %447 = arith.addf %444, %446 : vector<8x128xf32>
    %448 = arith.subf %235, %442 : vector<8x128xf32>
    %449 = math.exp %448 : vector<8x128xf32>
    %450 = arith.addf %447, %449 : vector<8x128xf32>
    %451 = arith.subf %439, %442 : vector<8x128xf32>
    %452 = math.exp %451 : vector<8x128xf32>
    %453 = arith.addf %450, %452 : vector<8x128xf32>
    %454 = arith.addf %205, %442 : vector<8x128xf32>
    %455 = math.log %453 : vector<8x128xf32>
    %456 = arith.addf %454, %455 : vector<8x128xf32>
    %c0_147 = arith.constant 0 : index
    %c0_148 = arith.constant 0 : index
    %457 = vector.load %arg7[%c0_147, %c0_148] : memref<8x128xf32, #tpu.memory_space<vmem>>, vector<8x128xf32>
    tpu.vector_store %arg7[%c0_147, %c0_148], %456 {strides = array<i32>} : memref<8x128xf32, #tpu.memory_space<vmem>>, vector<8x128xf32>,
    return
  }
  func.func @transform_0(%arg0: i32) -> i32 {
    %c0_i32 = arith.constant 0 : i32
    %c0_i32_0 = arith.constant 0 : i32
    return %c0_i32 : i32
  }
  func.func @transform_1(%arg0: i32) -> i32 {
    %c0_i32 = arith.constant 0 : i32
    %c0_i32_0 = arith.constant 0 : i32
    return %c0_i32 : i32
  }
  func.func @transform_2(%arg0: i32) -> i32 {
    %c0_i32 = arith.constant 0 : i32
    %c0_i32_0 = arith.constant 0 : i32
    return %c0_i32 : i32
  }
  func.func @transform_3(%arg0: i32) -> i32 {
    %c0_i32 = arith.constant 0 : i32
    %c0_i32_0 = arith.constant 0 : i32
    return %c0_i32 : i32
  }
  func.func @transform_4(%arg0: i32) -> (i32, i32) {
    %c0_i32 = arith.constant 0 : i32
    %c0_i32_0 = arith.constant 0 : i32
    return %arg0, %c0_i32 : i32, i32
  }
  func.func @transform_5(%arg0: i32) -> (i32, i32) {
    %c0_i32 = arith.constant 0 : i32
    %c0_i32_0 = arith.constant 0 : i32
    return %arg0, %c0_i32 : i32, i32
  }
  func.func @transform_6(%arg0: i32) -> (i32, i32) {
    %c0_i32 = arith.constant 0 : i32
    %c0_i32_0 = arith.constant 0 : i32
    return %arg0, %c0_i32 : i32, i32
  }
}

</mosaic_0001>

<bundles_post_ra>
// kernel: tpu_custom_call.1
= control target key start
LH: loop header
LB: loop body
LE: loop exit
PB: predicated region body
PF: predicated region fallthrough
CT: control target
= control target key end

     0   :  { %11 = vsyncpa [#allocation4], 0  ;;  %s837_s0 = inlined_call_operand.hbm [shape: f32[4], index: 0, kind: input, shape index: {}]   ;;  %s838_s1 = inlined_call_operand.vmem [shape: f32[3], index: 1, kind: input, shape index: {}]   ;;  %s839_s2 = inlined_call_operand.vmem [shape: f32[3], index: 2, kind: input, shape index: {}]   ;;  %s840_s3 = inlined_call_operand.hbm [shape: f32[3], index: 3, kind: input, shape index: {}]   ;;  %s841_s4 = inlined_call_operand.vmem [shape: f32[8,128], index: 4, kind: input, shape index: {}]   ;;  %s842_s5 = inlined_call_operand.vmem [shape: f32[8,128], index: 5, kind: input, shape index: {}]   ;;  %s843_s6 = inlined_call_operand.hbm [shape: f32[8,128], index: 6, kind: output, shape index: {}]  }
   0x1   :  { %12 = vsyncpa [#allocation5], 0 }
   0x2   :  { %13 = vsyncpa [#allocation8], 0 }
   0x3   :  { %14 = vsyncpa [#allocation10], 0 }
   0x4   :  { %15 = vsyncpa [#allocation3], 0  ;;  %s30_s23 = sshll.u32 %s838_s1, 4  ;;  %s484_s26 = scalar_lea.hbm %s837_s0, 16  ;;  %s31_s23 = int_to_ptr.vmem [resolvable:$true] %s30_s23 }
   0x5   :  { %p485_p0 = scmp.ne.s32.totalorder %s837_s0, %s484_s26  ;;  %p488_p1 = scmp.lt.u32.totalorder %s484_s26, %s837_s0 }
   0x7   :  { %p490_p2 = pnand %p488_p1, %p485_p0 }
   0x9   :  { %493 = shalt.err (!%p490_p2)
}
   0xa   :  { %s560_s7 = smov [#allocation2]   ;;  %s494_s1 = scalar_lea.vmem %s31_s23, 16 }
   0xb   :  { %23 = dma.hbm_to_smem %s837_s0, 16, %s560_s7, [#allocation4]  }
   0xc   :  { %p495_p3 = scmp.ne.s32.totalorder %s31_s23, %s494_s1  ;;  %p499_p4 = scmp.lt.s32.totalorder %s31_s23, %s31_s23 }
   0xd   :  { %p500_p5 = scmp.lt.s32.totalorder %s494_s1, %s494_s1 }
   0xf   :  { %p501_p6 = por %p500_p5, %p499_p4 }
  0x11   :  { %p502_p7 = pnand %p501_p6, %p495_p3 }
  0x13   :  { %505 = shalt.err (!%p502_p7)
}
  0x14   :  { %s561_s10 = smov [#allocation6]   ;;  %s40_s13 = sshll.u32 %s839_s2, 4  ;;  %s41_s13 = int_to_ptr.vmem [resolvable:$true] %s40_s13 }
  0x15   :  { %33 = dma.vmem_to_smem %s31_s23, 16, %s561_s10, [#allocation5]  }
  0x16   :  { %s506_s14 = scalar_lea.vmem %s41_s13, 16  ;;  %p511_p9 = scmp.lt.s32.totalorder %s41_s13, %s41_s13 }
  0x17   :  { %p507_p8 = scmp.ne.s32.totalorder %s41_s13, %s506_s14  ;;  %p512_p10 = scmp.lt.s32.totalorder %s506_s14, %s506_s14 }
  0x19   :  { %p513_p11 = por %p512_p10, %p511_p9 }
  0x1b   :  { %p514_p12 = pnand %p513_p11, %p507_p8 }
  0x1d   :  { %517 = shalt.err (!%p514_p12)
}
  0x1e   :  { %s562_s0 = smov [#allocation7]   ;;  %s518_s17 = scalar_lea.hbm %s840_s3, 16 }
  0x1f   :  { %43 = dma.vmem_to_smem %s41_s13, 16, %s562_s0, [#allocation8]  }
  0x20   :  { %p519_p13 = scmp.ne.s32.totalorder %s840_s3, %s518_s17  ;;  %p522_p0 = scmp.lt.u32.totalorder %s518_s17, %s840_s3 }
  0x22   :  { %p524_p1 = pnand %p522_p0, %p519_p13 }
  0x24   :  { %527 = shalt.err (!%p524_p1)
}
  0x25   :  { %s563_s21 = smov [#allocation9]  }
  0x26   :  { %51 = dma.hbm_to_smem %s840_s3, 16, %s563_s21, [#allocation10]  }
  0x27   :  { %550 = dma.done.wait [#allocation4], 16  }
  0x28   :  { %551 = vsyncadd [#allocation4], 4294967280 }
  0x29   :  { %552 = dma.done.wait [#allocation5], 16  }
  0x2a   :  { %553 = vsyncadd [#allocation5], 4294967280 }
  0x2b   :  { %554 = dma.done.wait [#allocation8], 16  }
  0x2c   :  { %555 = vsyncadd [#allocation8], 4294967280 }
  0x2d   :  { %556 = dma.done.wait [#allocation10], 16  }
  0x2e   :  { %557 = vsyncadd [#allocation10], 4294967280 }
  0x2f   :  { %68 = sfence }
  0x30   :  { %v69_v0 = vld [vmem:[%s841_s4] sm:$0xff]  ;;  %s72_s3 = sld [smem:[#allocation9]]  ;;  %s419_s28 = sld [smem:[#allocation9 + $0x1]] }
  0x31   :  { %v636_v1 = vld [vmem:[%s842_s5] sm:$0xff]  ;;  %v75_v2 = vadd.f32 1.0, %v69_v0  ;;  %s740_s4 = sld [smem:[#allocation6]]  ;;  %s751_s29 = sld [smem:[#allocation6 + $0x1]] }
  0x32   :  { %v639_v3 = vsub.f32 %v69_v0, %v636_v1  ;;  %v119_v4 = vadd.f32 1.0, %v636_v1  ;;  %s746_s5 = sld [smem:[#allocation7]]  ;;  %s754_s30 = sld [smem:[#allocation7 + $0x1]] }
  0x33   :  { %v642_v5 = vadd.f32 -1.0, %v75_v2  ;;  %s761_s7 = sld [smem:[#allocation2]]  ;;  %s763_s8 = sld [smem:[#allocation6 + $0x2]] }
  0x34   :  { %v164_v6 = vadd.f32 1.0, %v639_v3  ;;  %v645_v7 = vadd.f32 -1.0, %v119_v4  ;;  %s768_s9 = sld [smem:[#allocation7 + $0x2]]  ;;  %s776_s1 = sld [smem:[#allocation2 + $0x1]] }
  0x35   :  { %v77_v8 = vadd.f32 60.458332, %v642_v5  ;;  %v92_v9 = vadd.f32 36.0, %v642_v5  ;;  %s790_s10 = sld [smem:[#allocation2 + $0x2]]  ;;  %s564_s12 = smov [#allocation11]  }
  0x36   :  { %v649_v10 = vadd.f32 -1.0, %v164_v6  ;;  %v121_v11 = vadd.f32 60.458332, %v645_v7  ;;  %v239_v12 = vstv %s72_s3  ;;  %v136_v13 = vadd.f32 36.0, %v645_v7  ;;  %s805_s11 = sld [smem:[#allocation9 + $0x2]]  ;;  %s407_s13 = sshll.u32 %s564_s12, 4  ;;  %s408_s13 = int_to_ptr.vmem [resolvable:$true] %s407_s13 }
  0x37   :  { %v240_v14 = vadd.f32 %v239_v12, %v636_v1  ;;  %v284_v15 = vstv %s419_s28  ;;  %v330_v16 = vadd.f32 %v239_v12, %v69_v0  ;;  %v78_v17 = vmul.f32 %v642_v5, %v77_v8  ;;  %s528_s14 = scalar_lea.vmem %s408_s13, 128  ;;  %p533_p3 = scmp.lt.s32.totalorder %s408_s13, %s408_s13 }
  0x38   :  { %v285_v18 = vadd.f32 %v284_v15, %v639_v3  ;;  %v93_v19 = vmul.f32 %v642_v5, %v92_v9  ;;  %v181_v20 = vadd.f32 36.0, %v649_v10  ;;  %v122_v24 = vmul.f32 %v645_v7, %v121_v11  ;;  %p529_p2 = scmp.ne.s32.totalorder %s408_s13, %s528_s14  ;;  %p534_p4 = scmp.lt.s32.totalorder %s528_s14, %s528_s14 }
  0x39   :  { %v658_v21 = vadd.f32 -1.0, %v240_v14  ;;  %v331_v23 = vadd.f32 %v330_v16, %v284_v15  ;;  %v137_v25 = vmul.f32 %v645_v7, %v136_v13  ;;  %v79_v28 = vadd.f32 1599.0425, %v78_v17 }
  0x3a   :  { %v660_v22 = vadd.f32 -1.0, %v285_v18  ;;  %v94_v31 = vadd.f32 546.0, %v93_v19  ;;  %v182_v32 = vmul.f32 %v649_v10, %v181_v20  ;;  %v166_v35 = vadd.f32 60.458332, %v649_v10  ;;  %p535_p5 = por %p534_p4, %p533_p3 }
  0x3b   :  { %v242_v26 = vadd.f32 60.458332, %v658_v21  ;;  %v257_v27 = vadd.f32 36.0, %v658_v21  ;;  %v674_v38 = vadd.f32 -1.0, %v331_v23  ;;  %v123_v39 = vadd.f32 1599.0425, %v122_v24 }
  0x3c   :  { %v287_v29 = vadd.f32 60.458332, %v660_v22  ;;  %v302_v30 = vadd.f32 36.0, %v660_v22  ;;  %v138_v40 = vadd.f32 546.0, %v137_v25  ;;  %v183_v46 = vadd.f32 546.0, %v182_v32  ;;  %p536_p6 = pnand %p535_p5, %p529_p2 }
  0x3d   :  { %v243_v33 = vmul.f32 %v658_v21, %v242_v26  ;;  %v258_v34 = vmul.f32 %v658_v21, %v257_v27  ;;  %v333_v45 = vadd.f32 60.458332, %v674_v38  ;;  %v348_v49 = vadd.f32 36.0, %v674_v38 }
  0x3e   :  { %v288_v36 = vmul.f32 %v660_v22, %v287_v29  ;;  %v303_v37 = vmul.f32 %v660_v22, %v302_v30  ;;  %v95_v50 = vmul.f32 %v642_v5, %v94_v31  ;;  %v139_v54 = vmul.f32 %v645_v7, %v138_v40 }
  0x3f   :  { %v244_v41 = vadd.f32 1599.0425, %v243_v33  ;;  %v259_v42 = vadd.f32 546.0, %v258_v34  ;;  %v334_v53 = vmul.f32 %v674_v38, %v333_v45  ;;  %v349_v57 = vmul.f32 %v674_v38, %v348_v49 }
  0x40   :  { %v289_v43 = vadd.f32 1599.0425, %v288_v36  ;;  %v304_v44 = vadd.f32 546.0, %v303_v37  ;;  %v80_v58 = vmul.f32 %v642_v5, %v79_v28  ;;  %v184_v62 = vmul.f32 %v649_v10, %v183_v46 }
  0x41   :  { %v245_v47 = vmul.f32 %v658_v21, %v244_v41  ;;  %v260_v48 = vmul.f32 %v658_v21, %v259_v42  ;;  %v335_v61 = vadd.f32 1599.0425, %v334_v53  ;;  %v350_v2 = vadd.f32 546.0, %v349_v57 }
  0x42   :  { %v290_v51 = vmul.f32 %v660_v22, %v289_v43  ;;  %v305_v52 = vmul.f32 %v660_v22, %v304_v44  ;;  %v96_v4 = vadd.f32 4536.0, %v95_v50  ;;  %v140_v11 = vadd.f32 4536.0, %v139_v54 }
  0x43   :  { %v246_v55 = vadd.f32 24165.51, %v245_v47  ;;  %v261_v56 = vadd.f32 4536.0, %v260_v48  ;;  %v336_v9 = vmul.f32 %v674_v38, %v335_v61  ;;  %v351_v14 = vmul.f32 %v674_v38, %v350_v2 }
  0x44   :  { %v291_v59 = vadd.f32 24165.51, %v290_v51  ;;  %v306_v60 = vadd.f32 4536.0, %v305_v52  ;;  %v124_v15 = vmul.f32 %v645_v7, %v123_v39  ;;  %v167_v16 = vmul.f32 %v649_v10, %v166_v35 }
  0x45   :  { %v247_v63 = vmul.f32 %v658_v21, %v246_v55  ;;  %v262_v0 = vmul.f32 %v658_v21, %v261_v56  ;;  %v185_v19 = vadd.f32 4536.0, %v184_v62  ;;  %v337_v24 = vadd.f32 24165.51, %v336_v9 }
  0x46   :  { %v292_v6 = vmul.f32 %v660_v22, %v291_v59  ;;  %v307_v8 = vmul.f32 %v660_v22, %v306_v60  ;;  %v97_v25 = vmul.f32 %v642_v5, %v96_v4  ;;  %v352_v28 = vadd.f32 4536.0, %v351_v14 }
  0x47   :  { %v248_v12 = vadd.f32 228235.22, %v247_v63  ;;  %v263_v13 = vadd.f32 22449.0, %v262_v0  ;;  %v81_v29 = vadd.f32 24165.51, %v80_v58  ;;  %v141_v30 = vmul.f32 %v645_v7, %v140_v11 }
  0x48   :  { %v293_v17 = vadd.f32 228235.22, %v292_v6  ;;  %v308_v18 = vadd.f32 22449.0, %v307_v8  ;;  %v168_v33 = vadd.f32 1599.0425, %v167_v16  ;;  %v338_v35 = vmul.f32 %v674_v38, %v337_v24 }
  0x49   :  { %v249_v20 = vmul.f32 %v658_v21, %v248_v12  ;;  %v264_v23 = vmul.f32 %v658_v21, %v263_v13  ;;  %v353_v36 = vmul.f32 %v674_v38, %v352_v28  ;;  %v186_v37 = vmul.f32 %v649_v10, %v185_v19 }
  0x4a   :  { %v294_v26 = vmul.f32 %v660_v22, %v293_v17  ;;  %v309_v27 = vmul.f32 %v660_v22, %v308_v18  ;;  %v98_v42 = vadd.f32 22449.0, %v97_v25  ;;  %v125_v44 = vadd.f32 24165.51, %v124_v15 }
  0x4b   :  { %v250_v31 = vadd.f32 1379496.3, %v249_v20  ;;  %v265_v32 = vadd.f32 67284.0, %v264_v23  ;;  %v142_v45 = vadd.f32 22449.0, %v141_v30  ;;  %v82_v48 = vmul.f32 %v642_v5, %v81_v29 }
  0x4c   :  { %v295_v34 = vadd.f32 1379496.3, %v294_v26  ;;  %v310_v41 = vadd.f32 67284.0, %v309_v27  ;;  %v339_v50 = vadd.f32 228235.22, %v338_v35  ;;  %v169_v52 = vmul.f32 %v649_v10, %v168_v33 }
  0x4d   :  { %v251_v39 = vmul.f32 %v658_v21, %v250_v31  ;;  %v266_v40 = vmul.f32 %v658_v21, %v265_v32  ;;  %v354_v51 = vadd.f32 22449.0, %v353_v36  ;;  %v187_v53 = vadd.f32 22449.0, %v186_v37 }
  0x4e   :  { %v296_v43 = vmul.f32 %v660_v22, %v295_v34  ;;  %v311_v47 = vmul.f32 %v660_v22, %v310_v41  ;;  %v99_v56 = vmul.f32 %v642_v5, %v98_v42  ;;  %v340_v58 = vmul.f32 %v674_v38, %v339_v50 }
  0x4f   :  { %v267_v46 = vadd.f32 118124.0, %v266_v40  ;;  %v252_v49 = vadd.f32 5210869.0, %v251_v39  ;;  %v355_v59 = vmul.f32 %v674_v38, %v354_v51  ;;  %v143_v60 = vmul.f32 %v645_v7, %v142_v45 }
  0x50   :  { %v312_v55 = vadd.f32 118124.0, %v311_v47  ;;  %v297_v57 = vadd.f32 5210869.0, %v296_v43  ;;  %v717_v62 = vadd.f32 7.5, %v658_v21  ;;  %v722_v2 = vadd.f32 7.5, %v660_v22 }
  0x51   :  { %v268_v54 = vmul.f32 %v658_v21, %v267_v46  ;;  %v253_v0 = vmul.f32 %v658_v21, %v252_v49  ;;  %v341_v4 = vadd.f32 1379496.3, %v340_v58  ;;  %v356_v6 = vadd.f32 67284.0, %v355_v59 }
  0x52   :  { %v313_v63 = vmul.f32 %v660_v22, %v312_v55  ;;  %v126_v8 = vmul.f32 %v645_v7, %v125_v44  ;;  %v188_v9 = vmul.f32 %v649_v10, %v187_v53  ;;  %v170_v13 = vadd.f32 24165.51, %v169_v52 }
  0x53   :  { %v269_v61 = vadd.f32 109584.0, %v268_v54  ;;  %v298_v14 = vmul.f32 %v660_v22, %v297_v57  ;;  %v342_v15 = vmul.f32 %v674_v38, %v341_v4  ;;  %v357_v16 = vmul.f32 %v674_v38, %v356_v6 }
  0x54   :  { %v314_v12 = vadd.f32 109584.0, %v313_v63  ;;  %v100_v17 = vadd.f32 67284.0, %v99_v56  ;;  %438 = vlog2.f32 %v717_v62  ;;  %v144_v20 = vadd.f32 67284.0, %v143_v60 }
  0x55   :  { %v270_v11 = vmul.f32 %v658_v21, %v269_v61  ;;  %v254_v23 = vadd.f32 11246929.0, %v253_v0  ;;  %440 = vlog2.f32 %v722_v2  ;;  %v358_v24 = vadd.f32 118124.0, %v357_v16 }
  0x56   :  { %v315_v19 = vmul.f32 %v660_v22, %v314_v12  ;;  %v189_v25 = vadd.f32 67284.0, %v188_v9  ;;  %v343_v27 = vadd.f32 5210869.0, %v342_v15  ;;  %v83_v28 = vadd.f32 228235.22, %v82_v48 }
  0x57   :  { %v271_v18 = vadd.f32 40320.0, %v270_v11  ;;  %v127_v29 = vadd.f32 228235.22, %v126_v8  ;;  %v299_v30 = vadd.f32 11246929.0, %v298_v14  ;;  %v359_v31 = vmul.f32 %v674_v38, %v358_v24 }
  0x58   :  { %v316_v26 = vadd.f32 40320.0, %v315_v19  ;;  %v101_v32 = vmul.f32 %v642_v5, %v100_v17  ;;  %v171_v33 = vmul.f32 %v649_v10, %v170_v13  ;;  %v737_v34 = vadd.f32 7.5, %v674_v38 }
  0x59   :  { %442 = vrcp.f32 %v271_v18  ;;  %v145_v35 = vmul.f32 %v645_v7, %v144_v20  ;;  %v255_v36 = vmul.f32 %v658_v21, %v254_v23  ;;  %v360_v37 = vadd.f32 109584.0, %v359_v31 }
  0x5a   :  { %444 = vrcp.f32 %v316_v26  ;;  %v190_v39 = vmul.f32 %v649_v10, %v189_v25  ;;  %v344_v40 = vmul.f32 %v674_v38, %v343_v27  ;;  %v84_v41 = vmul.f32 %v642_v5, %v83_v28 }
  0x5b   :  { %v300_v42 = vmul.f32 %v660_v22, %v299_v30  ;;  %v361_v43 = vmul.f32 %v674_v38, %v360_v37  ;;  %v102_v44 = vadd.f32 118124.0, %v101_v32  ;;  %v128_v45 = vmul.f32 %v645_v7, %v127_v29 }
  0x5c   :  { %v172_v46 = vadd.f32 228235.22, %v171_v33  ;;  %446 = vlog2.f32 %v737_v34  ;;  %v146_v47 = vadd.f32 118124.0, %v145_v35  ;;  %v256_v48 = vadd.f32 10619610.0, %v255_v36 }
  0x5d   :  { %v362_v49 = vadd.f32 40320.0, %v361_v43  ;;  %v191_v51 = vadd.f32 118124.0, %v190_v39  ;;  %v345_v52 = vadd.f32 11246929.0, %v344_v40  ;;  %v103_v59 = vmul.f32 %v642_v5, %v102_v44 }
  0x5e   :  { %v439_v50 = vpop.eup %438  ;;  %v301_v54 = vadd.f32 10619610.0, %v300_v42  ;;  %v85_v56 = vadd.f32 1379496.3, %v84_v41  ;;  %v129_v57 = vadd.f32 1379496.3, %v128_v45  ;;  %v173_v58 = vmul.f32 %v649_v10, %v172_v46 }
  0x5f   :  { %v441_v53 = vpop.eup %440  ;;  %448 = vrcp.f32 %v362_v49  ;;  %v147_v60 = vmul.f32 %v645_v7, %v146_v47  ;;  %v210_v61 = vstv %s740_s4  ;;  %v192_v4 = vmul.f32 %v649_v10, %v191_v51 }
  0x60   :  { %v275_v6 = vadd.f32 0.5, %v658_v21  ;;  %v320_v8 = vadd.f32 0.5, %v660_v22  ;;  %v346_v9 = vmul.f32 %v674_v38, %v345_v52  ;;  %v277_v11 = vmul.f32 0.6931472, %v439_v50 }
  0x61   :  { %v322_v13 = vmul.f32 0.6931472, %v441_v53  ;;  %v86_v14 = vmul.f32 %v642_v5, %v85_v56  ;;  %v130_v15 = vmul.f32 %v645_v7, %v129_v57  ;;  %v174_v16 = vadd.f32 1379496.3, %v173_v58 }
  0x62   :  { %v213_v17 = vstv %s746_s5  ;;  %v104_v18 = vadd.f32 109584.0, %v103_v59  ;;  %v220_v19 = vstv %s751_s29  ;;  %v148_v22 = vadd.f32 109584.0, %v147_v60 }
  0x63   :  { %v443_v55 = vpop.eup %442  ;;  %v211_v20 = vmul.f32 %v210_v61, %v636_v1  ;;  %v223_v23 = vstv %s754_s30  ;;  %v347_v24 = vadd.f32 10619610.0, %v346_v9  ;;  %v193_v25 = vadd.f32 109584.0, %v192_v4 }
  0x64   :  { %v273_v63 = vmul.f32 %v443_v55, %v256_v48  ;;  %v445_v0 = vpop.eup %444  ;;  %v214_v26 = vmul.f32 %v213_v17, %v639_v3  ;;  %v278_v27 = vmul.f32 %v277_v11, %v275_v6  ;;  %v323_v28 = vmul.f32 %v322_v13, %v320_v8 }
  0x65   :  { %v318_v12 = vmul.f32 %v445_v0, %v301_v54  ;;  %v87_v29 = vadd.f32 5210869.0, %v86_v14  ;;  %v131_v30 = vadd.f32 5210869.0, %v130_v15  ;;  %v175_v31 = vmul.f32 %v649_v10, %v174_v16 }
  0x66   :  { %450 = vlog2.f32 %v273_v63  ;;  %v447_v21 = vpop.eup %446  ;;  %v221_v32 = vmul.f32 %v220_v19, %v636_v1  ;;  %v105_v35 = vmul.f32 %v642_v5, %v104_v18  ;;  %v224_v36 = vmul.f32 %v223_v23, %v639_v3 }
  0x67   :  { %452 = vlog2.f32 %v318_v12  ;;  %v366_v37 = vadd.f32 0.5, %v674_v38  ;;  %v368_v39 = vmul.f32 0.6931472, %v447_v21  ;;  %v149_v40 = vmul.f32 %v645_v7, %v148_v22 }
  0x68   :  { %v217_v41 = vstv %s761_s7  ;;  %v230_v42 = vstv %s763_s8  ;;  %v194_v44 = vmul.f32 %v649_v10, %v193_v25  ;;  %v233_v45 = vstv %s768_s9 }
  0x69   :  { %v449_v33 = vpop.eup %448  ;;  %v279_v46 = vadd.f32 0.9189385, %v278_v27  ;;  %v324_v47 = vadd.f32 0.9189385, %v323_v28  ;;  %v88_v48 = vmul.f32 %v642_v5, %v87_v29  ;;  %v176_v49 = vadd.f32 5210869.0, %v175_v31 }
  0x6a   :  { %v364_v43 = vmul.f32 %v449_v33, %v347_v24  ;;  %v215_v50 = vadd.f32 %v214_v26, %v211_v20  ;;  %v106_v51 = vadd.f32 40320.0, %v105_v35  ;;  %v132_v52 = vmul.f32 %v645_v7, %v131_v30 }
  0x6b   :  { %v225_v53 = vadd.f32 %v224_v36, %v221_v32  ;;  %v369_v54 = vmul.f32 %v368_v39, %v366_v37  ;;  %v150_v55 = vadd.f32 40320.0, %v149_v40  ;;  %v227_v56 = vstv %s776_s1 }
  0x6c   :  { %454 = vlog2.f32 %v364_v43  ;;  %v231_v57 = vmul.f32 %v230_v42, %v636_v1  ;;  %v234_v58 = vmul.f32 %v233_v45, %v639_v3  ;;  %v195_v60 = vadd.f32 40320.0, %v194_v44 }
  0x6d   :  { %v280_v61 = vsub.f32 %v279_v46, %v717_v62  ;;  %v325_v0 = vsub.f32 %v324_v47, %v722_v2  ;;  %v799_v4 = vadd.f32 7.5, %v642_v5  ;;  %v177_v6 = vmul.f32 %v649_v10, %v176_v49 }
  0x6e   :  { %456 = vrcp.f32 %v106_v51  ;;  %v803_v9 = vadd.f32 7.5, %v645_v7  ;;  %v218_v1 = vadd.f32 %v217_v41, %v215_v50  ;;  %v370_v3 = vadd.f32 0.9189385, %v369_v54 }
  0x6f   :  { %v89_v11 = vadd.f32 11246929.0, %v88_v48  ;;  %v133_v62 = vadd.f32 11246929.0, %v132_v52  ;;  %458 = vrcp.f32 %v150_v55  ;;  %v228_v12 = vadd.f32 %v227_v56, %v225_v53 }
  0x70   :  { %v451_v38 = vpop.eup %450  ;;  %460 = vrcp.f32 %v195_v60  ;;  %v235_v2 = vadd.f32 %v234_v58, %v231_v57  ;;  %v178_v15 = vadd.f32 11246929.0, %v177_v6  ;;  %v237_v16 = vstv %s790_s10 }
  0x71   :  { %v453_v59 = vpop.eup %452  ;;  %v282_v63 = vmul.f32 0.6931472, %v451_v38  ;;  %462 = vlog2.f32 %v799_v4  ;;  %v371_v17 = vsub.f32 %v370_v3, %v737_v34  ;;  %v90_v19 = vmul.f32 %v642_v5, %v89_v11 }
  0x72   :  { %v327_v8 = vmul.f32 0.6931472, %v453_v59  ;;  %v134_v21 = vmul.f32 %v645_v7, %v133_v62  ;;  %464 = vlog2.f32 %v803_v9  ;;  %v814_v22 = vadd.f32 7.5, %v649_v10 }
  0x73   :  { %v283_v13 = vadd.f32 %v282_v63, %v280_v61  ;;  %v238_v20 = vadd.f32 %v237_v16, %v235_v2  ;;  %v378_v25 = vmax.f32 %v218_v1, %v228_v12  ;;  %v179_v26 = vmul.f32 %v649_v10, %v178_v15 }
  0x74   :  { %v328_v14 = vadd.f32 %v327_v8, %v325_v0  ;;  %v91_v28 = vadd.f32 10619610.0, %v90_v19  ;;  %v376_v29 = vstv %s805_s11  ;;  %v135_v30 = vadd.f32 10619610.0, %v134_v21 }
  0x75   :  { %466 = vlog2.f32 %v814_v22  ;;  %v379_v32 = vmax.f32 %v378_v25, %v238_v20  ;;  %v180_v35 = vadd.f32 10619610.0, %v179_v26  ;;  %v110_v49 = vadd.f32 0.5, %v642_v5 }
  0x76   :  { %v455_v18 = vpop.eup %454  ;;  %v329_v23 = vadd.f32 %v328_v14, %v283_v13  ;;  %v154_v53 = vadd.f32 0.5, %v645_v7  ;;  %v199_v59 = vadd.f32 0.5, %v649_v10 }
  0x77   :  { %v373_v24 = vmul.f32 0.6931472, %v455_v18 }
  0x78   :  { %v457_v34 = vpop.eup %456 }
  0x79   :  { %v374_v27 = vadd.f32 %v373_v24, %v371_v17  ;;  %v459_v33 = vpop.eup %458  ;;  %v108_v39 = vmul.f32 %v457_v34, %v91_v28 }
  0x7a   :  { %v461_v36 = vpop.eup %460  ;;  %v152_v41 = vmul.f32 %v459_v33, %v135_v30 }
  0x7b   :  { %v375_v31 = vsub.f32 %v329_v23, %v374_v27  ;;  %v463_v40 = vpop.eup %462  ;;  %v197_v44 = vmul.f32 %v461_v36, %v180_v35  ;;  %468 = vlog2.f32 %v108_v39 }
  0x7c   :  { %v465_v43 = vpop.eup %464  ;;  %v112_v50 = vmul.f32 0.6931472, %v463_v40  ;;  %470 = vlog2.f32 %v152_v41 }
  0x7d   :  { %v377_v37 = vadd.f32 %v376_v29, %v375_v31  ;;  %v156_v54 = vmul.f32 0.6931472, %v465_v43  ;;  %472 = vlog2.f32 %v197_v44 }
  0x7e   :  { %v113_v57 = vmul.f32 %v112_v50, %v110_v49 }
  0x7f   :  { %v380_v42 = vmax.f32 %v379_v32, %v377_v37  ;;  %v467_v56 = vpop.eup %466  ;;  %v157_v58 = vmul.f32 %v156_v54, %v154_v53 }
  0x80   :  { %v201_v5 = vmul.f32 0.6931472, %v467_v56  ;;  %v114_v60 = vadd.f32 0.9189385, %v113_v57 }
  0x81   :  { %v381_v45 = vsub.f32 %v218_v1, %v380_v42  ;;  %v384_v46 = vsub.f32 %v228_v12, %v380_v42  ;;  %v388_v47 = vsub.f32 %v238_v20, %v380_v42  ;;  %v392_v48 = vsub.f32 %v377_v37, %v380_v42 }
  0x82   :  { %v158_v63 = vadd.f32 0.9189385, %v157_v58  ;;  %v202_v0 = vmul.f32 %v201_v5, %v199_v59  ;;  %v115_v1 = vsub.f32 %v114_v60, %v799_v4 }
  0x83   :  { %v382_v38 = vmul.f32 1.442695, %v381_v45  ;;  %v385_v51 = vmul.f32 1.442695, %v384_v46  ;;  %v389_v52 = vmul.f32 1.442695, %v388_v47 }
  0x84   :  { %v393_v55 = vmul.f32 1.442695, %v392_v48  ;;  %v159_v62 = vsub.f32 %v158_v63, %v803_v9  ;;  %v203_v2 = vadd.f32 0.9189385, %v202_v0 }
  0x85   :  { %474 = vpow2.f32 %v382_v38  ;;  %v469_v61 = vpop.eup %468 }
  0x86   :  { %476 = vpow2.f32 %v385_v51  ;;  %v471_v6 = vpop.eup %470  ;;  %v117_v11 = vmul.f32 0.6931472, %v469_v61  ;;  %v204_v18 = vsub.f32 %v203_v2, %v814_v22 }
  0x87   :  { %478 = vpow2.f32 %v389_v52  ;;  %v473_v8 = vpop.eup %472  ;;  %v161_v12 = vmul.f32 0.6931472, %v471_v6 }
  0x88   :  { %480 = vpow2.f32 %v393_v55  ;;  %v118_v16 = vadd.f32 %v117_v11, %v115_v1  ;;  %v206_v19 = vmul.f32 0.6931472, %v473_v8 }
  0x89   :  { %v162_v17 = vadd.f32 %v161_v12, %v159_v62 }
  0x8a   :  { %v207_v23 = vadd.f32 %v206_v19, %v204_v18 }
  0x8b   :  { %v163_v20 = vsub.f32 %v118_v16, %v162_v17 }
  0x8d   :  { %v208_v4 = vsub.f32 %v163_v20, %v207_v23 }
  0x8f   :  { %v475_v7 = vpop.eup %474  ;;  %v396_v24 = vadd.f32 %v380_v42, %v208_v4 }
  0x90   :  { %v477_v3 = vpop.eup %476 }
  0x91   :  { %v479_v13 = vpop.eup %478  ;;  %v387_v14 = vadd.f32 %v477_v3, %v475_v7 }
  0x92   :  { %v481_v10 = vpop.eup %480 }
  0x93   :  { %v391_v15 = vadd.f32 %v479_v13, %v387_v14 }
  0x95   :  { %v395_v21 = vadd.f32 %v481_v10, %v391_v15 }
  0x97   :  { %482 = vlog2.f32 %v395_v21 }
  0xa1   :  { %v483_v25 = vpop.eup %482 }
  0xa2   :  { %v398_v9 = vmul.f32 0.6931472, %v483_v25 }
  0xa4   :  { %v399_v26 = vadd.f32 %v398_v9, %v396_v24 }
  0xa6   :  { %400 = vst [vmem:[#allocation11] sm:$0xff] %v399_v26 }
  0xa7   :  { %539 = shalt.err (!%p536_p6)
}
  0xa8   :  { %s540_s16 = scalar_lea.hbm %s843_s6, 128 }
  0xa9   :  { %p541_p7 = scmp.ne.s32.totalorder %s843_s6, %s540_s16  ;;  %p544_p8 = scmp.lt.u32.totalorder %s540_s16, %s843_s6 }
  0xab   :  { %p546_p9 = pnand %p544_p8, %p541_p7 }
  0xad   :  { %549 = shalt.err (!%p546_p9)
}
  0xae   :  { %410 = dma.vmem_to_hbm [thread:$0]  %s408_s13, 128, %s843_s6, [#allocation3]  }
  0xaf   :  { %558 = dma.done.wait [#allocation3], 128  }
  0xb0   :  { %559 = vsyncadd [#allocation3], 4294967168 }
  0xb1   :  { %414 = vsyncpa [#allocation3], 1 }
  0xb2   :  { %415 = vsyncpa [#allocation4], 1 }
  0xb3   :  { %416 = vsyncpa [#allocation10], 1 }
  0xb4   :  { %417 = vsyncpa [#allocation5], 1 }
  0xb5   :  { %418 = vsyncpa [#allocation8], 1 }

</bundles_post_ra>
